<compile_context>
chip_gen: v5e
topology: v5e:2x2
jax: 0.10.0
libtpu: 0.0.40
codegen_flags: <defaults>
</compile_context>

<pallas_src>
import functools

import jax
import jax.numpy as jnp
from jax.experimental import pallas as pl
from jax.experimental.pallas import tpu as pltpu


def _center_loss_kernel(labels_ref, x_ref, c_ref, out_ref, *, block_b, batch):
    # labels_ref: (block_b, 1) int32 VMEM block of labels
    # x_ref:      (block_b, F) f32 VMEM block of the batch
    # c_ref:      (C, F) f32 VMEM (full centers table, resident)
    # out_ref:    (1, 8, 128) f32 lane-dense partial-sum slab for this grid step
    i = pl.program_id(0)
    C = c_ref.shape[0]

    # Vectorized gather via one-hot MXU matmul.  Rows with out-of-range labels
    # gather zeros (no OOB VMEM reads, unlike the old dynamic-slice gather).
    lbl = labels_ref[...]                                             # (bb, 1)
    onehot = jax.lax.broadcasted_iota(jnp.int32, (block_b, C), 1) == lbl
    g = jnp.dot(onehot.astype(jnp.float32), c_ref[...],
                preferred_element_type=jnp.float32)                   # (bb, F)

    # Per-row clipped squared distance (VPU sub/mul + XLU lane reduce).
    # TODO(synk): if F < 128 in production, pack 128//F samples per vreg row in
    # the wrapper for full lane occupancy; F >= 128 is assumed for peak VPU use.
    d = x_ref[...] - g
    row = jnp.sum(d * d, axis=1, keepdims=True)                       # (bb, 1)
    row = jnp.clip(row, 1e-12, 1.0e12)

    # Mask padded batch rows (global row index >= batch) before the partial sum.
    gidx = i * block_b + jax.lax.broadcasted_iota(jnp.int32, (block_b, 1), 0)
    row = jnp.where(gidx < batch, row, 0.0)

    s = jnp.sum(row)                                                  # scalar
    out_ref[...] = jnp.full((1, 8, 128), s, dtype=jnp.float32)


def _round_up(n, m):
    return ((n + m - 1) // m) * m


def center_loss(x, centers, labels, *, target_block_bytes=2 << 20):
    B, F = x.shape
    C, F2 = centers.shape
    assert F == F2
    x = x.astype(jnp.float32)
    centers = centers.astype(jnp.float32)
    labels = labels.astype(jnp.int32).reshape(B, 1)

    # Byte-sized batch blocks (~2 MiB of x per step) amortize the ~0.35 us
    # per-grid-step overhead; block rows are a multiple of 8 sublanes.
    rows = max(8, (target_block_bytes // (4 * F)) // 8 * 8)
    b8 = _round_up(B, 8)
    if b8 <= rows:
        # Whole batch fits one block.  When large enough, split into two even
        # blocks so both v7x TensorCores get work on the "parallel" grid axis.
        bb = _round_up((b8 + 1) // 2, 8) if b8 >= 256 else b8
    else:
        bb = rows
    b_pad = _round_up(b8, bb)
    nb = b_pad // bb

    if b_pad != B:
        x = jnp.pad(x, ((0, b_pad - B), (0, 0)))
        labels = jnp.pad(labels, ((0, b_pad - B), (0, 0)))

    kernel = functools.partial(_center_loss_kernel, block_b=bb, batch=B)

    # Explicit VMEM budget: double-buffered x+labels blocks, resident centers,
    # tiny per-step output.  Keeps us inside v5e's 16 MiB default scoped limit
    # for small problems and within v7x's 64 MiB physical VMEM for big ones.
    vmem_est = 2 * (bb * F * 4 + bb * 4) + 2 * C * F * 4 + 2 * 8 * 128 * 4
    vmem_limit = int(min(max(vmem_est + (4 << 20), 16 << 20), 64 << 20))
    # TODO(synk): for very large C*F (resident centers table >> VMEM) tile
    # centers over C with an extra "arbitrary" grid axis and accumulate the
    # one-hot matmul per C-tile.

    partials = pl.pallas_call(
        kernel,
        out_shape=jax.ShapeDtypeStruct((nb, 8, 128), jnp.float32),
        grid=(nb,),
        in_specs=[
            pl.BlockSpec((bb, 1), lambda i: (i, 0)),   # labels block (VMEM)
            pl.BlockSpec((bb, F), lambda i: (i, 0)),   # x batch block
            pl.BlockSpec((C, F), lambda i: (0, 0)),    # centers (resident)
        ],
        out_specs=pl.BlockSpec((1, 8, 128), lambda i: (i, 0, 0)),
        compiler_params=pltpu.CompilerParams(
            dimension_semantics=("parallel",),  # independent batch blocks
            vmem_limit_bytes=vmem_limit,
        ),
    )(labels, x, centers)

    # Tiny final reduction over the nb per-block partial sums.
    return jnp.sum(partials[:, 0, 0]) / B


def center_loss_ref(x, centers, labels):
    # Pure-JAX reference mirroring the PyTorch formulation.
    B = x.shape[0]
    distmat = (
        jnp.sum(x * x, axis=1, keepdims=True)
        + jnp.sum(centers * centers, axis=1)[None, :]
        - 2.0 * x @ centers.T
    )
    sel = distmat[jnp.arange(B), labels]
    sel = jnp.clip(sel, 1e-12, 1.0e12)
    return jnp.mean(sel)


if __name__ == "__main__":
    # Module __init__ shapes: centers = (cls_num, featur_num)
    cls_num = 16
    featur_num = 32
    batch = 8

    key = jax.random.PRNGKey(0)
    kx, kc, kl = jax.random.split(key, 3)

    x = jax.random.normal(kx, (batch, featur_num), dtype=jnp.float32)
    centers = jax.random.normal(kc, (cls_num, featur_num), dtype=jnp.float32)
    labels = jax.random.randint(kl, (batch,), 0, cls_num, dtype=jnp.int32)

    loss = center_loss(x, centers, labels)
    jax.block_until_ready(loss)

    ref = center_loss_ref(x, centers, labels)
    assert jnp.allclose(loss, ref, rtol=1e-5, atol=1e-4), (loss, ref)

    print("KERNEL_OK")
</pallas_src>

<mosaic_0001>
module attributes {stable_mosaic.version = 11 : i64} {
  func.func @_center_loss_kernel(%arg0: i32, %arg1: memref<8x1xi32, #tpu.memory_space<vmem>>, %arg2: memref<8x32xf32, #tpu.memory_space<vmem>>, %arg3: memref<16x32xf32, #tpu.memory_space<vmem>>, %arg4: memref<1x8x128xf32, #tpu.memory_space<vmem>>) attributes {dimension_semantics = [#tpu.dimension_semantics<parallel>], iteration_bounds = array<i64: 1>, scalar_prefetch = 0 : i64, scratch_operands = 0 : i64, tpu.core_type = #tpu.core_type<tc>, window_params = [{transform_indices = @transform_0, window_bounds = array<i64: 8, 1>}, {transform_indices = @transform_1, window_bounds = array<i64: 8, 32>}, {pipeline_mode = #tpu.pipeline_mode<synchronous>, transform_indices = @transform_2, window_bounds = array<i64: 16, 32>}, {transform_indices = @transform_3, window_bounds = array<i64: 1, 8, 128>}]} {
    %c0 = arith.constant 0 : index
    %c0_0 = arith.constant 0 : index
    %0 = vector.load %arg1[%c0, %c0_0] : memref<8x1xi32, #tpu.memory_space<vmem>>, vector<8x1xi32>
    %1 = tpu.iota {dimensions = array<i32: 1>} : vector<8x16xi32>
    %2 = vector.broadcast %0 : vector<8x1xi32> to vector<8x16xi32>
    %3 = arith.cmpi eq, %1, %2 : vector<8x16xi32>
    %4 = arith.extui %3 : vector<8x16xi1> to vector<8x16xi32>
    %5 = arith.sitofp %4 : vector<8x16xi32> to vector<8x16xf32>
    %c0_1 = arith.constant 0 : index
    %c0_2 = arith.constant 0 : index
    %6 = vector.load %arg3[%c0_1, %c0_2] : memref<16x32xf32, #tpu.memory_space<vmem>>, vector<16x32xf32>
    %cst = arith.constant dense<0.000000e+00> : vector<8x32xf32>
    %7 = tpu.matmul %5, %6, %cst {dimension_numbers = #tpu.dot_dimension_numbers<[1], [0], [0], [1], [0, 0, 1, 1], [], []>} : vector<8x16xf32>, vector<16x32xf32>, vector<8x32xf32> -> vector<8x32xf32>
    %c0_3 = arith.constant 0 : index
    %c0_4 = arith.constant 0 : index
    %8 = vector.load %arg2[%c0_3, %c0_4] : memref<8x32xf32, #tpu.memory_space<vmem>>, vector<8x32xf32>
    %9 = arith.subf %8, %7 : vector<8x32xf32>
    %10 = arith.mulf %9, %9 : vector<8x32xf32>
    %cst_5 = arith.constant dense<0.000000e+00> : vector<8xf32>
    %11 = vector.multi_reduction <add>, %10, %cst_5 [1] : vector<8x32xf32> to vector<8xf32>
    %12 = vector.shape_cast %11 : vector<8xf32> to vector<8x1xf32>
    %cst_6 = arith.constant 9.99999996E-13 : f32
    %cst_7 = arith.constant 9.99999995E+11 : f32
    %13 = vector.broadcast %cst_6 : f32 to vector<8x1xf32>
    %14 = arith.maximumf %13, %12 : vector<8x1xf32>
    %15 = vector.broadcast %cst_7 : f32 to vector<8x1xf32>
    %16 = arith.minimumf %15, %14 : vector<8x1xf32>
    %c8_i32 = arith.constant 8 : i32
    %17 = arith.muli %arg0, %c8_i32 : i32
    %18 = tpu.iota {dimensions = array<i32: 0>} : vector<8x1xi32>
    %19 = vector.broadcast %17 : i32 to vector<8x1xi32>
    %20 = arith.addi %19, %18 : vector<8x1xi32>
    %c8_i32_8 = arith.constant 8 : i32
    %21 = vector.broadcast %c8_i32_8 : i32 to vector<8x1xi32>
    %22 = arith.cmpi slt, %20, %21 : vector<8x1xi32>
    %cst_9 = arith.constant 0.000000e+00 : f32
    %23 = vector.broadcast %cst_9 : f32 to vector<8x1xf32>
    %24 = arith.select %22, %16, %23 : vector<8x1xi1>, vector<8x1xf32>
    %25 = vector.shape_cast %24 : vector<8x1xf32> to vector<1x8x1xf32>
    %cst_10 = arith.constant dense<0.000000e+00> : vector<1xf32>
    %26 = vector.multi_reduction <add>, %25, %cst_10 [1, 2] : vector<1x8x1xf32> to vector<1xf32>
    %27 = vector.shape_cast %26 : vector<1xf32> to vector<1x1x1xf32>
    %28 = vector.extract %27[0, 0, 0] : f32 from vector<1x1x1xf32>
    %29 = vector.broadcast %28 : f32 to vector<1x8x128xf32>
    %c0_11 = arith.constant 0 : index
    %c0_12 = arith.constant 0 : index
    %c0_13 = arith.constant 0 : index
    %30 = vector.load %arg4[%c0_11, %c0_12, %c0_13] : memref<1x8x128xf32, #tpu.memory_space<vmem>>, vector<1x8x128xf32>
    tpu.vector_store %arg4[%c0_11, %c0_12, %c0_13], %29 {strides = array<i32>} : memref<1x8x128xf32, #tpu.memory_space<vmem>>, vector<1x8x128xf32>,
    return
  }
  func.func @transform_0(%arg0: i32) -> (i32, i32) {
    %c0_i32 = arith.constant 0 : i32
    %c0_i32_0 = arith.constant 0 : i32
    return %arg0, %c0_i32 : i32, i32
  }
  func.func @transform_1(%arg0: i32) -> (i32, i32) {
    %c0_i32 = arith.constant 0 : i32
    %c0_i32_0 = arith.constant 0 : i32
    return %arg0, %c0_i32 : i32, i32
  }
  func.func @transform_2(%arg0: i32) -> (i32, i32) {
    %c0_i32 = arith.constant 0 : i32
    %c0_i32_0 = arith.constant 0 : i32
    %c0_i32_1 = arith.constant 0 : i32
    return %c0_i32, %c0_i32_0 : i32, i32
  }
  func.func @transform_3(%arg0: i32) -> (i32, i32, i32) {
    %c0_i32 = arith.constant 0 : i32
    %c0_i32_0 = arith.constant 0 : i32
    %c0_i32_1 = arith.constant 0 : i32
    return %arg0, %c0_i32, %c0_i32_0 : i32, i32, i32
  }
}

</mosaic_0001>

<bundles_post_ra>
// kernel: tpu_custom_call.1
= control target key start
LH: loop header
LB: loop body
LE: loop exit
PB: predicated region body
PF: predicated region fallthrough
CT: control target
= control target key end

     0   :  { %8 = vsyncpa [#allocation3], 0  ;;  %s213_s0 = inlined_call_operand.vmem [shape: s32[8,1], index: 0, kind: input, shape index: {}]   ;;  %s214_s1 = inlined_call_operand.vmem [shape: f32[8,32], index: 1, kind: input, shape index: {}]   ;;  %s215_s2 = inlined_call_operand.hbm [shape: f32[16,32], index: 2, kind: input, shape index: {}]   ;;  %s216_s3 = inlined_call_operand.hbm [shape: f32[1,8,128], index: 3, kind: output, shape index: {}]  }
   0x1   :  { %9 = vsyncpa [#allocation4], 0  ;;  %s18_s14 = sshll.u32 %s215_s2, 4  ;;  %s175_s15 = smov [#allocation2]   ;;  %s19_s14 = int_to_ptr.hbm [resolvable:$true] %s18_s14 }
   0x2   :  { %s20_s16 = sshll.u32 %s175_s15, 4  ;;  %s176_s17 = smov 128   ;;  %s21_s16 = int_to_ptr.vmem [resolvable:$true] %s20_s16 }
   0x3   :  { %s177_s18 = smov 8  }
   0x4   :  { %26 = dma.hbm_to_vmem [thread:$0]  %s19_s14, 256, %s21_s16, [#allocation3], %s176_s17, %s176_s17, %s177_s18  }
   0x5   :  { %171 = dma.done.wait [#allocation3], 256  }
   0x6   :  { %172 = vsyncadd [#allocation3], 4294967040  ;;  %v178_v0 = vmov 0   ;;  %v31_v1 = vld [vmem:[%s213_s0] sm:$0xff]  ;;  %v41_v2 = vld [vmem:[#allocation2 + $0x8] sm:$0xff]  ;;  %v32_v4 = vlaneseq  ;;  %vm42_vm0 = vcmask 130048  }
   0x7   :  { %122 = vset.pattern.permute.xlu0 %v178_v0  ;;  %60 = vmatpush.msra.mxu0 %v41_v2  ;;  %v40_v3 = vld [vmem:[#allocation2] sm:$0xff]  ;;  %v179_v7 = vmov 0.0   ;;  %vm69_vm2 = vcmask 261120   ;;  %vm82_vm3 = vcmask 7168   ;;  %s180_s0 = smov [#allocation5]   ;;  %s102_s24 = sshll.u32 %s216_s3, 4  ;;  %s103_s24 = int_to_ptr.hbm [resolvable:$true] %s102_s24 }
   0x8   :  { %35 = vperm.xlu0 %122, %v31_v1   ;;  %v33_v5 = vand.u32 127, %v32_v4  ;;  %v66_v9 = vld [vmem:[%s214_s1] sm:$0xff]  ;;  %s100_s1 = sshll.u32 %s180_s0, 4  ;;  %s101_s1 = int_to_ptr.vmem [resolvable:$true] %s100_s1 }
   0x9   :  { %61 = vmatpush.msra.mxu0 %v40_v3 }
  0x7a   :  { %v36_v6 = vpop.permute.xlu0 %35 }
  0x7b   :  { %vm37_vm1 = vcmp.eq.s32.totalorder %v33_v5, %v36_v6 }
  0x7c   :  { %v112_v8 = vsel %vm37_vm1, 1.0, %v179_v7 }
  0x7d   :  { %113 = vmatmul.msk.f32.vlgmr.msra.gmra.mxu0 %vm42_vm0, %v112_v8 }
  0xfa   :  { %v63_v10 = vpop.f32.mrf.mxu0 }
  0xfb   :  { %v67_v11 = vsub.f32 %v66_v9, %v63_v10 }
  0xfd   :  { %v68_v12 = vmul.f32 %v67_v11, %v67_v11 }
  0xff   :  { %v70_v13 = vsel %vm69_vm2, %v68_v12, 0.0 }
 0x100   :  { %71 = vadd.xlane.f32.xlu0 %v70_v13 }
 0x173   :  { %v72_v14 = vpop.xlane.xlu0 %71 }
 0x174   :  { %v73_v15 = vmax.f32 %v72_v14, 1e-12 }
 0x176   :  { %v74_v16 = vmin.f32 %v73_v15, 1e+12 }
 0x178   :  { %v83_v17 = vsel %vm82_vm3, %v74_v16, 0.0 }
 0x179   :  { %84 = vadd.xlane.f32.xlu1 %v83_v17 }
 0x1ec   :  { %v85_v18 = vpop.xlane.xlu1 %84 }
 0x1ed   :  { %v86_v19 = vrot.slane %v85_v18, 4 }
 0x1ef   :  { %v87_v20 = vadd.f32 %v86_v19, %v85_v18 }
 0x1f1   :  { %v88_v21 = vrot.slane %v87_v20, 2 }
 0x1f3   :  { %v89_v22 = vadd.f32 %v88_v21, %v87_v20 }
 0x1f5   :  { %v90_v23 = vrot.slane %v89_v22, 1 }
 0x1f7   :  { %v91_v24 = vadd.f32 %v90_v23, %v89_v22 }
 0x1f9   :  { %114 = vpush %v91_v24 }
 0x22a   :  { %s115_s25 = spop %114 }
 0x22b   :  { %v93_v25 = vstv %s115_s25 }
 0x22c   :  { %94 = vst [vmem:[#allocation5] sm:$0xff] %v93_v25 }
 0x22d   :  { %105 = dma.vmem_to_hbm [thread:$0]  %s101_s1, 128, %s103_s24, [#allocation4]  }
 0x22e   :  { %173 = dma.done.wait [#allocation4], 128  }
 0x22f   :  { %174 = vsyncadd [#allocation4], 4294967168 }
 0x230   :  { %110 = vsyncpa [#allocation3], 1 }
 0x231   :  { %111 = vsyncpa [#allocation4], 1 }

</bundles_post_ra>
